<compile_context>
chip_gen: v5e
topology: v5e:2x2
jax: 0.10.0
libtpu: 0.0.40
codegen_flags: <defaults>
</compile_context>

<pallas_src>
import jax
import jax.numpy as jnp
from jax.experimental import pallas as pl
from jax.experimental.pallas import tpu as pltpu


def _round_up(x, m):
    return ((x + m - 1) // m) * m


def _vmem_capacity_bytes():
    try:
        return int(pltpu.get_tpu_info().vmem_capacity_bytes)
    except Exception:
        return 64 * 1024 * 1024  # v7x per-TensorCore VMEM: smallest of the three gens


def _pick_batch_tile(B, tb_max):
    """Pad B only to a multiple of 8; split into near-equal tiles (>=2 when possible)."""
    B8 = _round_up(max(B, 1), 8)
    grid_b = max(1, pl.cdiv(B8, tb_max))
    if B8 >= 16:
        grid_b = max(grid_b, 2)  # give v7x's second TensorCore work
    TB = _round_up(pl.cdiv(B8, grid_b), 8)
    grid_b = pl.cdiv(B8, TB)
    return TB, grid_b, TB * grid_b


def _largest_tile(total_p, cap):
    """Largest multiple of 128 that divides total_p (a multiple of 128) and is <= cap."""
    m = total_p // 128
    for d in range(min(m, max(1, cap // 128)), 0, -1):
        if m % d == 0:
            return d * 128
    return 128


def prepare_marg_params(weight, bias, compute_dtype="auto"):
    """One-time parameter prep (hoist out of the hot path).

    weight: (F_out, F_in) PyTorch nn.Linear layout; bias: (F_out,).
    Returns (w_t_p, b_p, F_out) with w_t_p: (F_in_p, F_out_p) in compute dtype and
    b_p: (1, F_out_p) float32.
    """
    F_out, F_in = weight.shape
    if isinstance(compute_dtype, str) and compute_dtype == "auto":
        # bf16 inputs (f32 accumulate) pay off for non-trivial head sizes on all gens.
        compute_dtype = (
            jnp.bfloat16
            if (weight.dtype == jnp.float32 and F_in * F_out >= 256 * 256)
            else weight.dtype
        )
    elif compute_dtype is None:
        compute_dtype = weight.dtype

    F_in_p = _round_up(F_in, 128)
    F_out_p = _round_up(F_out, 128)

    w_t = weight.T  # (F_in, F_out): MXU-native (K, N) orientation
    if (F_in_p, F_out_p) != (F_in, F_out):
        w_t = jnp.pad(w_t, ((0, F_in_p - F_in), (0, F_out_p - F_out)))
    w_t = w_t.astype(compute_dtype)

    b_p = bias.astype(jnp.float32)
    if F_out_p != F_out:
        b_p = jnp.pad(b_p, (0, F_out_p - F_out))
    return w_t, b_p.reshape(1, F_out_p), F_out


def _linear_resident_kernel(x_ref, w_ref, b_ref, o_ref):
    # x_ref: (TB, K_p) batch tile; w_ref: (K_p, N_p) VMEM-resident; b_ref: (1, N_p) f32.
    acc = jnp.dot(x_ref[...], w_ref[...], preferred_element_type=jnp.float32)
    o_ref[...] = (acc + b_ref[...]).astype(o_ref.dtype)


def _linear_tiled_kernel(x_ref, w_ref, b_ref, o_ref, acc_ref):
    # Grid (B tiles, N tiles, K tiles); K is the sequential reduction axis.
    k = pl.program_id(2)

    @pl.when(k == 0)
    def _init():
        acc_ref[...] = jnp.zeros_like(acc_ref)

    acc_ref[...] += jnp.dot(x_ref[...], w_ref[...], preferred_element_type=jnp.float32)

    @pl.when(k == pl.num_programs(2) - 1)
    def _finalize():
        o_ref[...] = (acc_ref[...] + b_ref[...]).astype(o_ref.dtype)


def marg_forward(x, weight=None, bias=None, *, params=None, compute_dtype="auto",
                 tb_max=512, vmem_budget_bytes=None):
    """MARG forward (Linear head): logits = x @ W^T + b.

    Pass params=prepare_marg_params(weight, bias) to hoist the one-time
    pad / transpose / cast of the weight out of the hot path; otherwise the raw
    PyTorch-layout (F_out, F_in) weight and (F_out,) bias are prepared per call.
    """
    if params is None:
        assert weight is not None and bias is not None
        params = prepare_marg_params(weight, bias, compute_dtype)
    w_t_p, b_p, F_out = params
    K_p, N_p = w_t_p.shape

    B, F_in = x.shape
    assert F_in <= K_p, "x feature dim exceeds prepared weight inner dim"
    out_dtype = x.dtype
    cdtype = w_t_p.dtype
    in_sz = jnp.dtype(cdtype).itemsize
    out_sz = jnp.dtype(out_dtype).itemsize

    cap = _vmem_capacity_bytes()
    budget = int(vmem_budget_bytes) if vmem_budget_bytes is not None else int(cap * 0.7)

    B8 = _round_up(max(B, 1), 8)
    TB, grid_b, B_p = _pick_batch_tile(B, tb_max)

    # ---- resident path: whole weight single-copied into VMEM, grid over batch only ----
    def resident_usage(tb):
        return (2 * tb * K_p * in_sz        # double-buffered x tile
                + K_p * N_p * in_sz         # resident weight (single copy)
                + N_p * 4                   # resident f32 bias
                + 2 * tb * N_p * out_sz)    # double-buffered output tile

    while resident_usage(TB) > budget and TB > 64:
        TB = max(64, _round_up(TB // 2, 8))
    use_resident = resident_usage(TB) <= budget

    if use_resident:
        grid_b = pl.cdiv(B8, TB)
        B_p = TB * grid_b
        usage = resident_usage(TB)
    else:
        # ---- tiled fallback: grid (B, N, K) with an f32 accumulator scratch ----
        tk_cap = tn_cap = 512
        TK = _largest_tile(K_p, tk_cap)
        TN = _largest_tile(N_p, tn_cap)

        def tiled_usage(tb, tk, tn):
            return (2 * tb * tk * in_sz      # x tile
                    + 2 * tk * tn * in_sz    # weight tile
                    + 2 * tn * 4             # bias tile
                    + 2 * tb * tn * out_sz   # output tile
                    + tb * tn * 4)           # accumulator scratch

        while tiled_usage(TB, TK, TN) > budget:
            if TK >= TN and TK > 128:
                tk_cap = max(128, TK // 2)
                TK = _largest_tile(K_p, tk_cap)
            elif TN > 128:
                tn_cap = max(128, TN // 2)
                TN = _largest_tile(N_p, tn_cap)
            elif TB > 8:
                TB = max(8, _round_up(TB // 2, 8))
            else:
                break  # minimal tiles; let the compiler take it from here
        grid_b = pl.cdiv(B8, TB)
        B_p = TB * grid_b
        usage = tiled_usage(TB, TK, TN)

    # Pad x only when actually needed (skip entirely for aligned shapes).
    x_p = x
    if (B_p, K_p) != (B, F_in):
        x_p = jnp.pad(x, ((0, B_p - B), (0, K_p - F_in)))
    if x_p.dtype != cdtype:
        x_p = x_p.astype(cdtype)

    vmem_limit = int(min(max(usage * 3 // 2, 16 * 1024 * 1024), int(cap * 0.9)))
    cost = pl.CostEstimate(
        flops=2 * B_p * K_p * N_p,
        transcendentals=0,
        bytes_accessed=int(B_p * K_p * in_sz + K_p * N_p * in_sz
                           + N_p * 4 + B_p * N_p * out_sz),
    )

    if use_resident:
        grid = (grid_b,)
        x_spec = pl.BlockSpec((TB, K_p), lambda i: (i, 0))
        out_spec = pl.BlockSpec((TB, N_p), lambda i: (i, 0))

        def build(resident):
            if resident:
                # Whole W / bias placed once in VMEM: single copy, no double-buffering.
                w_spec = pl.BlockSpec(memory_space=pltpu.MemorySpace.VMEM)
                b_spec = pl.BlockSpec(memory_space=pltpu.MemorySpace.VMEM)
            else:
                # Guarded fallback: blocked full-array specs with a constant index map.
                w_spec = pl.BlockSpec((K_p, N_p), lambda i: (0, 0))
                b_spec = pl.BlockSpec((1, N_p), lambda i: (0, 0))
            return pl.pallas_call(
                _linear_resident_kernel,
                out_shape=jax.ShapeDtypeStruct((B_p, N_p), out_dtype),
                grid=grid,
                in_specs=[x_spec, w_spec, b_spec],
                out_specs=out_spec,
                compiler_params=pltpu.CompilerParams(
                    dimension_semantics=("parallel",),
                    vmem_limit_bytes=vmem_limit),
                cost_estimate=cost,
            )

        try:
            out_p = build(True)(x_p, w_t_p, b_p)
        except Exception:
            out_p = build(False)(x_p, w_t_p, b_p)
    else:
        grid = (grid_b, N_p // TN, K_p // TK)
        out_p = pl.pallas_call(
            _linear_tiled_kernel,
            out_shape=jax.ShapeDtypeStruct((B_p, N_p), out_dtype),
            grid=grid,
            in_specs=[
                pl.BlockSpec((TB, TK), lambda i, j, k: (i, k)),
                pl.BlockSpec((TK, TN), lambda i, j, k: (k, j)),
                pl.BlockSpec((1, TN), lambda i, j, k: (0, j)),
            ],
            out_specs=pl.BlockSpec((TB, TN), lambda i, j, k: (i, j)),
            scratch_shapes=[pltpu.VMEM((TB, TN), jnp.float32)],
            compiler_params=pltpu.CompilerParams(
                dimension_semantics=("parallel", "parallel", "arbitrary"),
                vmem_limit_bytes=vmem_limit),
            cost_estimate=cost,
        )(x_p, w_t_p, b_p)

    # Strip the batch / lane padding.
    return out_p[:B, :F_out]


if __name__ == "__main__":
    key = jax.random.PRNGKey(0)
    k1, k2, k3, k4, k5, k6 = jax.random.split(key, 6)

    # --- Test 1: small head, f32, resident (weight fully VMEM-resident) path ---
    B, F_IN, F_OUT = 8, 32, 16       # batch, out_features, architecture[-1]
    x = jax.random.normal(k1, (B, F_IN), dtype=jnp.float32)
    w = jax.random.normal(k2, (F_OUT, F_IN), dtype=jnp.float32) * 0.05
    b = jax.random.normal(k3, (F_OUT,), dtype=jnp.float32) * 0.01

    logits = marg_forward(x, w, b)
    jax.block_until_ready(logits)
    ref = x @ w.T + b
    assert logits.shape == (B, F_OUT)
    assert jnp.allclose(logits, ref, atol=1e-5, rtol=1e-5), "f32 resident path mismatch"

    # --- Test 2: params prepared once (hot-path hoisting) with bf16 compute ---
    params = prepare_marg_params(w, b, compute_dtype=jnp.bfloat16)
    logits_bf16 = marg_forward(x, params=params)
    jax.block_until_ready(logits_bf16)
    assert logits_bf16.shape == (B, F_OUT)
    assert jnp.allclose(logits_bf16, ref, atol=5e-2, rtol=5e-2), "bf16 path mismatch"

    # --- Test 3: force the (B, N, K)-tiled fallback via a tiny VMEM budget ---
    B2, F_IN2, F_OUT2 = 96, 384, 320
    x2 = jax.random.normal(k4, (B2, F_IN2), dtype=jnp.float32)
    w2 = jax.random.normal(k5, (F_OUT2, F_IN2), dtype=jnp.float32) * 0.05
    b2 = jax.random.normal(k6, (F_OUT2,), dtype=jnp.float32) * 0.01
    logits2 = marg_forward(x2, w2, b2, compute_dtype=None, vmem_budget_bytes=200_000)
    jax.block_until_ready(logits2)
    ref2 = x2 @ w2.T + b2
    assert logits2.shape == (B2, F_OUT2)
    assert jnp.allclose(logits2, ref2, atol=2e-3, rtol=2e-3), "tiled path mismatch"

    print("KERNEL_OK")
</pallas_src>

<mosaic_0001>
module attributes {stable_mosaic.version = 11 : i64} {
  func.func @_linear_resident_kernel(%arg0: i32, %arg1: memref<8x128xf32, #tpu.memory_space<vmem>>, %arg2: memref<128x128xf32, #tpu.memory_space<vmem>>, %arg3: memref<1x128xf32, #tpu.memory_space<vmem>>, %arg4: memref<8x128xf32, #tpu.memory_space<vmem>>) attributes {dimension_semantics = [#tpu.dimension_semantics<parallel>], iteration_bounds = array<i64: 1>, scalar_prefetch = 0 : i64, scratch_operands = 0 : i64, tpu.core_type = #tpu.core_type<tc>, window_params = [{transform_indices = @transform_0, window_bounds = array<i64: 8, 128>}, {pipeline_mode = #tpu.pipeline_mode<synchronous>, transform_indices = @transform_1, window_bounds = array<i64: 128, 128>}, {pipeline_mode = #tpu.pipeline_mode<synchronous>, transform_indices = @transform_2, window_bounds = array<i64: 1, 128>}, {transform_indices = @transform_3, window_bounds = array<i64: 8, 128>}]} {
    %c0 = arith.constant 0 : index
    %c0_0 = arith.constant 0 : index
    %0 = vector.load %arg1[%c0, %c0_0] : memref<8x128xf32, #tpu.memory_space<vmem>>, vector<8x128xf32>
    %c0_1 = arith.constant 0 : index
    %c0_2 = arith.constant 0 : index
    %1 = vector.load %arg2[%c0_1, %c0_2] : memref<128x128xf32, #tpu.memory_space<vmem>>, vector<128x128xf32>
    %cst = arith.constant dense<0.000000e+00> : vector<8x128xf32>
    %2 = tpu.matmul %0, %1, %cst {dimension_numbers = #tpu.dot_dimension_numbers<[1], [0], [0], [1], [0, 0, 1, 1], [], []>} : vector<8x128xf32>, vector<128x128xf32>, vector<8x128xf32> -> vector<8x128xf32>
    %c0_3 = arith.constant 0 : index
    %c0_4 = arith.constant 0 : index
    %3 = vector.load %arg3[%c0_3, %c0_4] : memref<1x128xf32, #tpu.memory_space<vmem>>, vector<1x128xf32>
    %4 = vector.broadcast %3 : vector<1x128xf32> to vector<8x128xf32>
    %5 = arith.addf %2, %4 : vector<8x128xf32>
    %c0_5 = arith.constant 0 : index
    %c0_6 = arith.constant 0 : index
    %6 = vector.load %arg4[%c0_5, %c0_6] : memref<8x128xf32, #tpu.memory_space<vmem>>, vector<8x128xf32>
    tpu.vector_store %arg4[%c0_5, %c0_6], %5 {strides = array<i32>} : memref<8x128xf32, #tpu.memory_space<vmem>>, vector<8x128xf32>,
    return
  }
  func.func @transform_0(%arg0: i32) -> (i32, i32) {
    %c0_i32 = arith.constant 0 : i32
    %c0_i32_0 = arith.constant 0 : i32
    return %arg0, %c0_i32 : i32, i32
  }
  func.func @transform_1(%arg0: i32) -> (i32, i32) {
    %c0_i32 = arith.constant 0 : i32
    %c0_i32_0 = arith.constant 0 : i32
    %c0_i32_1 = arith.constant 0 : i32
    return %c0_i32, %c0_i32_0 : i32, i32
  }
  func.func @transform_2(%arg0: i32) -> (i32, i32) {
    %c0_i32 = arith.constant 0 : i32
    %c0_i32_0 = arith.constant 0 : i32
    %c0_i32_1 = arith.constant 0 : i32
    return %c0_i32, %c0_i32_0 : i32, i32
  }
  func.func @transform_3(%arg0: i32) -> (i32, i32) {
    %c0_i32 = arith.constant 0 : i32
    %c0_i32_0 = arith.constant 0 : i32
    return %arg0, %c0_i32 : i32, i32
  }
}

module attributes {stable_mosaic.version = 11 : i64} {
  func.func @_linear_resident_kernel(%arg0: i32, %arg1: memref<8x128xf32, #tpu.memory_space<vmem>>, %arg2: memref<128x128xf32, #tpu.memory_space<vmem>>, %arg3: memref<1x128xf32, #tpu.memory_space<vmem>>, %arg4: memref<8x128xf32, #tpu.memory_space<vmem>>) attributes {dimension_semantics = [#tpu.dimension_semantics<parallel>], iteration_bounds = array<i64: 1>, scalar_prefetch = 0 : i64, scratch_operands = 0 : i64, tpu.core_type = #tpu.core_type<tc>, window_params = [{transform_indices = @transform_0, window_bounds = array<i64: 8, 128>}, {pipeline_mode = #tpu.pipeline_mode<synchronous>, transform_indices = @transform_1, window_bounds = array<i64: 128, 128>}, {pipeline_mode = #tpu.pipeline_mode<synchronous>, transform_indices = @transform_2, window_bounds = array<i64: 1, 128>}, {transform_indices = @transform_3, window_bounds = array<i64: 8, 128>}]} {
    %c0 = arith.constant 0 : index
    %c0_0 = arith.constant 0 : index
    %0 = vector.load %arg1[%c0, %c0_0] : memref<8x128xf32, #tpu.memory_space<vmem>>, vector<8x128xf32>
    %c0_1 = arith.constant 0 : index
    %c0_2 = arith.constant 0 : index
    %1 = vector.load %arg2[%c0_1, %c0_2] : memref<128x128xf32, #tpu.memory_space<vmem>>, vector<128x128xf32>
    %cst = arith.constant dense<0.000000e+00> : vector<8x128xf32>
    %2 = tpu.matmul %0, %1, %cst {dimension_numbers = #tpu.dot_dimension_numbers<[1], [0], [0], [1], [0, 0, 1, 1], [], []>} : vector<8x128xf32>, vector<128x128xf32>, vector<8x128xf32> -> vector<8x128xf32>
    %c0_3 = arith.constant 0 : index
    %c0_4 = arith.constant 0 : index
    %3 = vector.load %arg3[%c0_3, %c0_4] : memref<1x128xf32, #tpu.memory_space<vmem>>, vector<1x128xf32>
    %4 = vector.broadcast %3 : vector<1x128xf32> to vector<8x128xf32>
    %5 = arith.addf %2, %4 : vector<8x128xf32>
    %c0_5 = arith.constant 0 : index
    %c0_6 = arith.constant 0 : index
    %6 = vector.load %arg4[%c0_5, %c0_6] : memref<8x128xf32, #tpu.memory_space<vmem>>, vector<8x128xf32>
    tpu.vector_store %arg4[%c0_5, %c0_6], %5 {strides = array<i32>} : memref<8x128xf32, #tpu.memory_space<vmem>>, vector<8x128xf32>,
    return
  }
  func.func @transform_0(%arg0: i32) -> (i32, i32) {
    %c0_i32 = arith.constant 0 : i32
    %c0_i32_0 = arith.constant 0 : i32
    return %arg0, %c0_i32 : i32, i32
  }
  func.func @transform_1(%arg0: i32) -> (i32, i32) {
    %c0_i32 = arith.constant 0 : i32
    %c0_i32_0 = arith.constant 0 : i32
    %c0_i32_1 = arith.constant 0 : i32
    return %c0_i32, %c0_i32_0 : i32, i32
  }
  func.func @transform_2(%arg0: i32) -> (i32, i32) {
    %c0_i32 = arith.constant 0 : i32
    %c0_i32_0 = arith.constant 0 : i32
    %c0_i32_1 = arith.constant 0 : i32
    return %c0_i32, %c0_i32_0 : i32, i32
  }
  func.func @transform_3(%arg0: i32) -> (i32, i32) {
    %c0_i32 = arith.constant 0 : i32
    %c0_i32_0 = arith.constant 0 : i32
    return %arg0, %c0_i32 : i32, i32
  }
}

</mosaic_0001>

<bundles_post_ra>
// kernel: tpu_custom_call.1
= control target key start
LH: loop header
LB: loop body
LE: loop exit
PB: predicated region body
PF: predicated region fallthrough
CT: control target
= control target key end

     0   :  { %8 = vsyncpa [#allocation3], 0  ;;  %s226_s0 = inlined_call_operand.hbm [shape: f32[8,128], index: 0, kind: input, shape index: {}]   ;;  %s227_s1 = inlined_call_operand.hbm [shape: f32[128,128], index: 1, kind: input, shape index: {}]   ;;  %s228_s2 = inlined_call_operand.vmem [shape: f32[1,128], index: 2, kind: input, shape index: {}]   ;;  %s229_s3 = inlined_call_operand.hbm [shape: f32[8,128], index: 3, kind: output, shape index: {}]  }
   0x1   :  { %9 = vsyncpa [#allocation6], 0 }
   0x2   :  { %10 = vsyncpa [#allocation4], 0  ;;  %s16_s14 = sshll.u32 %s226_s0, 4  ;;  %s189_s15 = smov [#allocation2]   ;;  %s17_s14 = int_to_ptr.hbm [resolvable:$true] %s16_s14 }
   0x3   :  { %s18_s16 = sshll.u32 %s189_s15, 4  ;;  %s26_s19 = sshll.u32 %s227_s1, 4  ;;  %s19_s16 = int_to_ptr.vmem [resolvable:$true] %s18_s16  ;;  %s27_s19 = int_to_ptr.hbm [resolvable:$true] %s26_s19 }
   0x4   :  { %21 = dma.hbm_to_vmem [thread:$0]  %s17_s14, 128, %s19_s16, [#allocation3]  }
   0x5   :  { %s190_s20 = smov [#allocation5]   ;;  %s191_s22 = smov 128  }
   0x6   :  { %s28_s21 = sshll.u32 %s190_s20, 4  ;;  %s192_s23 = smov 8   ;;  %s29_s21 = int_to_ptr.vmem [resolvable:$true] %s28_s21 }
   0x7   :  { %34 = dma.hbm_to_vmem [thread:$0]  %s27_s19, 2048, %s29_s21, [#allocation6], %s191_s22, %s191_s22, %s192_s23  }
   0x8   :  { %183 = dma.done.wait [#allocation3], 128  }
   0x9   :  { %184 = vsyncadd [#allocation3], 4294967168 }
   0xa   :  { %185 = dma.done.wait [#allocation6], 2048  }
   0xb   :  { %186 = vsyncadd [#allocation6], 4294965248  ;;  %v61_v0 = vld [vmem:[#allocation5 + $0x78] sm:$0xff]  ;;  %v60_v1 = vld [vmem:[#allocation5 + $0x70] sm:$0xff]  ;;  %s193_s24 = smov [#allocation7]   ;;  %s94_s28 = sshll.u32 %s229_s3, 4  ;;  %s95_s28 = int_to_ptr.hbm [resolvable:$true] %s94_s28 }
   0xc   :  { %66 = vmatpush.msra.mxu0 %v61_v0  ;;  %v59_v2 = vld [vmem:[#allocation5 + $0x68] sm:$0xff]  ;;  %v58_v3 = vld [vmem:[#allocation5 + $0x60] sm:$0xff]  ;;  %v57_v4 = vld [vmem:[#allocation5 + $0x58] sm:$0xff]  ;;  %s92_s25 = sshll.u32 %s193_s24, 4  ;;  %s93_s25 = int_to_ptr.vmem [resolvable:$true] %s92_s25 }
   0xd   :  { %v56_v5 = vld [vmem:[#allocation5 + $0x50] sm:$0xff]  ;;  %v55_v6 = vld [vmem:[#allocation5 + $0x48] sm:$0xff]  ;;  %v54_v7 = vld [vmem:[#allocation5 + $0x40] sm:$0xff] }
   0xe   :  { %67 = vmatpush.msra.mxu0 %v60_v1  ;;  %v53_v8 = vld [vmem:[#allocation5 + $0x38] sm:$0xff]  ;;  %v52_v9 = vld [vmem:[#allocation5 + $0x30] sm:$0xff]  ;;  %v51_v10 = vld [vmem:[#allocation5 + $0x28] sm:$0xff] }
   0xf   :  { %v50_v11 = vld [vmem:[#allocation5 + $0x20] sm:$0xff]  ;;  %v49_v12 = vld [vmem:[#allocation5 + $0x18] sm:$0xff]  ;;  %v48_v13 = vld [vmem:[#allocation5 + $0x10] sm:$0xff] }
  0x10   :  { %68 = vmatpush.msra.mxu0 %v59_v2  ;;  %v47_v14 = vld [vmem:[#allocation5 + $0x8] sm:$0xff]  ;;  %v46_v15 = vld [vmem:[#allocation5] sm:$0xff]  ;;  %v45_v16 = vld [vmem:[#allocation2] sm:$0xff] }
  0x11   :  { %v110_v17 = vld [vmem:[%s228_s2] ss:$0 sm:$0xff] }
  0x12   :  { %69 = vmatpush.msra.mxu0 %v58_v3 }
  0x14   :  { %70 = vmatpush.msra.mxu0 %v57_v4 }
  0x16   :  { %71 = vmatpush.msra.mxu0 %v56_v5 }
  0x18   :  { %72 = vmatpush.msra.mxu0 %v55_v6 }
  0x1a   :  { %73 = vmatpush.msra.mxu0 %v54_v7 }
  0x1c   :  { %74 = vmatpush.msra.mxu0 %v53_v8 }
  0x1e   :  { %75 = vmatpush.msra.mxu0 %v52_v9 }
  0x20   :  { %76 = vmatpush.msra.mxu0 %v51_v10 }
  0x22   :  { %77 = vmatpush.msra.mxu0 %v50_v11 }
  0x24   :  { %78 = vmatpush.msra.mxu0 %v49_v12 }
  0x26   :  { %79 = vmatpush.msra.mxu0 %v48_v13 }
  0x28   :  { %80 = vmatpush.msra.mxu0 %v47_v14 }
  0x2a   :  { %81 = vmatpush.msra.mxu0 %v46_v15 }
  0x2b   :  { %82 = vmatmul.f32.vlgmr.msra.gmra.mxu0 %v45_v16 }
  0xa8   :  { %v83_v18 = vpop.f32.mrf.mxu0 }
  0xa9   :  { %v84_v19 = vadd.f32 %v110_v17, %v83_v18 }
  0xab   :  { %86 = vst [vmem:[#allocation7] sm:$0xff] %v84_v19 }
  0xac   :  { %97 = dma.vmem_to_hbm [thread:$0]  %s93_s25, 128, %s95_s28, [#allocation4]  }
  0xad   :  { %187 = dma.done.wait [#allocation4], 128  }
  0xae   :  { %188 = vsyncadd [#allocation4], 4294967168 }
  0xaf   :  { %102 = vsyncpa [#allocation3], 1 }
  0xb0   :  { %103 = vsyncpa [#allocation6], 1 }
  0xb1   :  { %104 = vsyncpa [#allocation4], 1 }

// kernel: tpu_custom_call.1
= control target key start
LH: loop header
LB: loop body
LE: loop exit
PB: predicated region body
PF: predicated region fallthrough
CT: control target
= control target key end

     0   :  { %8 = vsyncpa [#allocation3], 0  ;;  %s226_s0 = inlined_call_operand.hbm [shape: f32[8,128], index: 0, kind: input, shape index: {}]   ;;  %s227_s1 = inlined_call_operand.hbm [shape: f32[128,128], index: 1, kind: input, shape index: {}]   ;;  %s228_s2 = inlined_call_operand.vmem [shape: f32[1,128], index: 2, kind: input, shape index: {}]   ;;  %s229_s3 = inlined_call_operand.hbm [shape: f32[8,128], index: 3, kind: output, shape index: {}]  }
   0x1   :  { %9 = vsyncpa [#allocation6], 0 }
   0x2   :  { %10 = vsyncpa [#allocation4], 0  ;;  %s16_s14 = sshll.u32 %s226_s0, 4  ;;  %s189_s15 = smov [#allocation2]   ;;  %s17_s14 = int_to_ptr.hbm [resolvable:$true] %s16_s14 }
   0x3   :  { %s18_s16 = sshll.u32 %s189_s15, 4  ;;  %s26_s19 = sshll.u32 %s227_s1, 4  ;;  %s19_s16 = int_to_ptr.vmem [resolvable:$true] %s18_s16  ;;  %s27_s19 = int_to_ptr.hbm [resolvable:$true] %s26_s19 }
   0x4   :  { %21 = dma.hbm_to_vmem [thread:$0]  %s17_s14, 128, %s19_s16, [#allocation3]  }
   0x5   :  { %s190_s20 = smov [#allocation5]   ;;  %s191_s22 = smov 128  }
   0x6   :  { %s28_s21 = sshll.u32 %s190_s20, 4  ;;  %s192_s23 = smov 8   ;;  %s29_s21 = int_to_ptr.vmem [resolvable:$true] %s28_s21 }
   0x7   :  { %34 = dma.hbm_to_vmem [thread:$0]  %s27_s19, 2048, %s29_s21, [#allocation6], %s191_s22, %s191_s22, %s192_s23  }
   0x8   :  { %183 = dma.done.wait [#allocation3], 128  }
   0x9   :  { %184 = vsyncadd [#allocation3], 4294967168 }
   0xa   :  { %185 = dma.done.wait [#allocation6], 2048  }
   0xb   :  { %186 = vsyncadd [#allocation6], 4294965248  ;;  %v61_v0 = vld [vmem:[#allocation5 + $0x78] sm:$0xff]  ;;  %v60_v1 = vld [vmem:[#allocation5 + $0x70] sm:$0xff]  ;;  %s193_s24 = smov [#allocation7]   ;;  %s94_s28 = sshll.u32 %s229_s3, 4  ;;  %s95_s28 = int_to_ptr.hbm [resolvable:$true] %s94_s28 }
   0xc   :  { %66 = vmatpush.msra.mxu0 %v61_v0  ;;  %v59_v2 = vld [vmem:[#allocation5 + $0x68] sm:$0xff]  ;;  %v58_v3 = vld [vmem:[#allocation5 + $0x60] sm:$0xff]  ;;  %v57_v4 = vld [vmem:[#allocation5 + $0x58] sm:$0xff]  ;;  %s92_s25 = sshll.u32 %s193_s24, 4  ;;  %s93_s25 = int_to_ptr.vmem [resolvable:$true] %s92_s25 }
   0xd   :  { %v56_v5 = vld [vmem:[#allocation5 + $0x50] sm:$0xff]  ;;  %v55_v6 = vld [vmem:[#allocation5 + $0x48] sm:$0xff]  ;;  %v54_v7 = vld [vmem:[#allocation5 + $0x40] sm:$0xff] }
   0xe   :  { %67 = vmatpush.msra.mxu0 %v60_v1  ;;  %v53_v8 = vld [vmem:[#allocation5 + $0x38] sm:$0xff]  ;;  %v52_v9 = vld [vmem:[#allocation5 + $0x30] sm:$0xff]  ;;  %v51_v10 = vld [vmem:[#allocation5 + $0x28] sm:$0xff] }
   0xf   :  { %v50_v11 = vld [vmem:[#allocation5 + $0x20] sm:$0xff]  ;;  %v49_v12 = vld [vmem:[#allocation5 + $0x18] sm:$0xff]  ;;  %v48_v13 = vld [vmem:[#allocation5 + $0x10] sm:$0xff] }
  0x10   :  { %68 = vmatpush.msra.mxu0 %v59_v2  ;;  %v47_v14 = vld [vmem:[#allocation5 + $0x8] sm:$0xff]  ;;  %v46_v15 = vld [vmem:[#allocation5] sm:$0xff]  ;;  %v45_v16 = vld [vmem:[#allocation2] sm:$0xff] }
  0x11   :  { %v110_v17 = vld [vmem:[%s228_s2] ss:$0 sm:$0xff] }
  0x12   :  { %69 = vmatpush.msra.mxu0 %v58_v3 }
  0x14   :  { %70 = vmatpush.msra.mxu0 %v57_v4 }
  0x16   :  { %71 = vmatpush.msra.mxu0 %v56_v5 }
  0x18   :  { %72 = vmatpush.msra.mxu0 %v55_v6 }
  0x1a   :  { %73 = vmatpush.msra.mxu0 %v54_v7 }
  0x1c   :  { %74 = vmatpush.msra.mxu0 %v53_v8 }
  0x1e   :  { %75 = vmatpush.msra.mxu0 %v52_v9 }
  0x20   :  { %76 = vmatpush.msra.mxu0 %v51_v10 }
  0x22   :  { %77 = vmatpush.msra.mxu0 %v50_v11 }
  0x24   :  { %78 = vmatpush.msra.mxu0 %v49_v12 }
  0x26   :  { %79 = vmatpush.msra.mxu0 %v48_v13 }
  0x28   :  { %80 = vmatpush.msra.mxu0 %v47_v14 }
  0x2a   :  { %81 = vmatpush.msra.mxu0 %v46_v15 }
  0x2b   :  { %82 = vmatmul.f32.vlgmr.msra.gmra.mxu0 %v45_v16 }
  0xa8   :  { %v83_v18 = vpop.f32.mrf.mxu0 }
  0xa9   :  { %v84_v19 = vadd.f32 %v110_v17, %v83_v18 }
  0xab   :  { %86 = vst [vmem:[#allocation7] sm:$0xff] %v84_v19 }
  0xac   :  { %97 = dma.vmem_to_hbm [thread:$0]  %s93_s25, 128, %s95_s28, [#allocation4]  }
  0xad   :  { %187 = dma.done.wait [#allocation4], 128  }
  0xae   :  { %188 = vsyncadd [#allocation4], 4294967168 }
  0xaf   :  { %102 = vsyncpa [#allocation3], 1 }
  0xb0   :  { %103 = vsyncpa [#allocation6], 1 }
  0xb1   :  { %104 = vsyncpa [#allocation4], 1 }

</bundles_post_ra>
